<compile_context>
chip_gen: v7x
topology: tpu7x:2x2x1
jax: 0.10.0
libtpu: 0.0.40
codegen_flags: <defaults>
</compile_context>

<pallas_src>
import jax
import jax.numpy as jnp
from jax.experimental import pallas as pl
from jax.experimental.pallas import tpu as pltpu

_LANE = 128      # lane width  (last dim alignment)
_SUBLANE = 8     # sublane     (second-to-last dim alignment, f32)


def _round_up(n, m):
    return ((n + m - 1) // m) * m


# ----------------------------------------------------------------------------
# Fused whole-network kernel.
# refs = (x_ref, w0, b0, w1, b1, ..., o_ref); all feature dims padded to 128.
# `plan` is a static tuple describing the layer sequence, so the Python loop
# below unrolls at trace time into a single straight-line kernel.
# ----------------------------------------------------------------------------
def _make_fused_kernel(plan):
    def kernel(*refs):
        x_ref = refs[0]
        o_ref = refs[-1]
        prefs = refs[1:-1]
        cursor = [0]

        def next_wb():
            w = prefs[cursor[0]][...]
            b = prefs[cursor[0] + 1][...]
            cursor[0] += 2
            return w, b

        def linear(h, w, b):
            return jnp.dot(h, w, preferred_element_type=jnp.float32) + b

        h = x_ref[...].astype(jnp.float32)
        for entry in plan:
            kind = entry[0]
            if kind == "first":
                # Linear -> BN(eval, folded) -> ReLU -> Dropout(identity)
                w, b = next_wb()
                h = jnp.maximum(linear(h, w, b), 0.0)
            elif kind == "res":
                # lin1 -> bn1 -> relu -> lin2 -> bn2 -> dropout -> +shortcut -> relu
                has_shortcut = entry[1]
                w1, b1 = next_wb()
                w2, b2 = next_wb()
                if has_shortcut:
                    ws, bs = next_wb()
                    sc = linear(h, ws, bs)
                else:
                    sc = h
                t = jnp.maximum(linear(h, w1, b1), 0.0)
                h = jnp.maximum(linear(t, w2, b2) + sc, 0.0)
            else:  # "final"
                w, b = next_wb()
                h = linear(h, w, b)
        o_ref[...] = h.astype(o_ref.dtype)

    return kernel


# ----------------------------------------------------------------------------
# Parameter initialization (mirrors nn.Linear / nn.BatchNorm1d defaults).
# Weights stored as (in_features, out_features) so kernels compute x @ W + b.
# ----------------------------------------------------------------------------
def _init_linear(key, fan_in, fan_out):
    kw, kb = jax.random.split(key)
    bound = 1.0 / (fan_in ** 0.5)
    w = jax.random.uniform(kw, (fan_in, fan_out), jnp.float32, -bound, bound)
    b = jax.random.uniform(kb, (fan_out,), jnp.float32, -bound, bound)
    return w, b


def _bn_params(dim, eps=1e-5):
    return dict(gamma=jnp.ones((dim,), jnp.float32),
                beta=jnp.zeros((dim,), jnp.float32),
                mean=jnp.zeros((dim,), jnp.float32),
                var=jnp.ones((dim,), jnp.float32),
                eps=eps)


def init_params(key, input_dim, hidden_layers, output_dim):
    """Raw (un-folded, un-padded) parameters mirroring the PyTorch module."""
    layers = []
    cur = input_dim
    for i, h in enumerate(hidden_layers):
        if i == 0:
            key, k1 = jax.random.split(key)
            w, b = _init_linear(k1, cur, h)
            layers.append(dict(kind="first", w=w, b=b, bn=_bn_params(h)))
        else:
            key, k1, k2, k3 = jax.random.split(key, 4)
            w1, b1 = _init_linear(k1, cur, h)
            w2, b2 = _init_linear(k2, h, h)
            blk = dict(kind="res", w1=w1, b1=b1, bn1=_bn_params(h),
                       w2=w2, b2=b2, bn2=_bn_params(h), shortcut=None)
            if cur != h:
                blk["shortcut"] = _init_linear(k3, cur, h)
            layers.append(blk)
        cur = h
    key, kf = jax.random.split(key)
    wf, bf = _init_linear(kf, cur, output_dim)
    layers.append(dict(kind="final", w=wf, b=bf))
    return layers


# ----------------------------------------------------------------------------
# Fold BN into Linear and pad everything to lane-dense (multiples of 128).
# ----------------------------------------------------------------------------
def _fold_bn(w, b, bn):
    scale = bn["gamma"] / jnp.sqrt(bn["var"] + bn["eps"])
    shift = bn["beta"] - bn["mean"] * scale
    return w * scale[None, :], b * scale + shift


def _pad_wb(w, b):
    pin = _round_up(w.shape[0], _LANE)
    pout = _round_up(w.shape[1], _LANE)
    wp = jnp.zeros((pin, pout), jnp.float32).at[:w.shape[0], :w.shape[1]].set(w)
    bp = jnp.zeros((1, pout), jnp.float32).at[0, :b.shape[0]].set(b)
    return wp, bp


def build_model(layers, output_dim):
    plan = []
    flat = []  # (w_padded, b_padded) pairs in the order the kernel consumes them
    for p in layers:
        if p["kind"] == "first":
            w, b = _fold_bn(p["w"], p["b"], p["bn"])
            flat.append(_pad_wb(w, b))
            plan.append(("first",))
        elif p["kind"] == "res":
            w1, b1 = _fold_bn(p["w1"], p["b1"], p["bn1"])
            w2, b2 = _fold_bn(p["w2"], p["b2"], p["bn2"])
            has_sc = p["shortcut"] is not None
            flat.append(_pad_wb(w1, b1))
            flat.append(_pad_wb(w2, b2))
            if has_sc:
                flat.append(_pad_wb(*p["shortcut"]))
            plan.append(("res", has_sc))
        else:  # final
            flat.append(_pad_wb(p["w"], p["b"]))
            plan.append(("final",))
    return dict(plan=tuple(plan), flat=flat, output_dim=output_dim)


# ----------------------------------------------------------------------------
# Forward pass: one pallas_call, batch-tiled grid, weights resident in VMEM.
# ----------------------------------------------------------------------------
def mlp_forward(x, model):
    plan = model["plan"]
    flat = model["flat"]
    output_dim = model["output_dim"]

    B, Din = x.shape
    Pin = flat[0][0].shape[0]     # padded input width
    Pout = flat[-1][0].shape[1]   # padded output width

    # Batch tile: lane-/sublane-aligned; large batches split into 128-row tiles.
    TB = _LANE if B >= _LANE else _round_up(B, _SUBLANE)
    Bp = _round_up(B, TB)

    x_pad = jnp.zeros((Bp, Pin), jnp.float32).at[:B, :Din].set(
        x.astype(jnp.float32))

    args = [x_pad]
    in_specs = [pl.BlockSpec((TB, Pin), lambda i: (i, 0))]
    flops = 0
    for w, b in flat:
        pin, pout = w.shape
        args += [w, b]
        in_specs += [pl.BlockSpec((pin, pout), lambda i: (0, 0)),
                     pl.BlockSpec((1, pout), lambda i: (0, 0))]
        flops += 2 * Bp * pin * pout

    bytes_accessed = sum(int(a.size) * a.dtype.itemsize for a in args)
    bytes_accessed += Bp * Pout * 4

    out = pl.pallas_call(
        _make_fused_kernel(plan),
        out_shape=jax.ShapeDtypeStruct((Bp, Pout), jnp.float32),
        grid=(Bp // TB,),
        in_specs=in_specs,
        out_specs=pl.BlockSpec((TB, Pout), lambda i: (i, 0)),
        compiler_params=pltpu.CompilerParams(
            dimension_semantics=("parallel",),
            vmem_limit_bytes=32 * 1024 * 1024,
        ),
        cost_estimate=pl.CostEstimate(
            flops=flops, transcendentals=0, bytes_accessed=bytes_accessed),
    )(*args)

    return out[:B, :output_dim]


# ----------------------------------------------------------------------------
# Pure-JAX reference (un-folded BN in eval mode, un-padded params).
# ----------------------------------------------------------------------------
def mlp_forward_ref(x, layers):
    def bn(h, p):
        return ((h - p["mean"]) / jnp.sqrt(p["var"] + p["eps"])
                * p["gamma"] + p["beta"])

    h = x
    for p in layers:
        if p["kind"] == "first":
            h = jnp.maximum(bn(h @ p["w"] + p["b"], p["bn"]), 0.0)
        elif p["kind"] == "res":
            t = jnp.maximum(bn(h @ p["w1"] + p["b1"], p["bn1"]), 0.0)
            out = bn(t @ p["w2"] + p["b2"], p["bn2"])
            if p["shortcut"] is not None:
                sc = h @ p["shortcut"][0] + p["shortcut"][1]
            else:
                sc = h
            h = jnp.maximum(out + sc, 0.0)
        else:
            h = h @ p["w"] + p["b"]
    return h


if __name__ == "__main__":
    input_dim = 16
    hidden_layers = [32, 64, 64]   # layer0: Linear+BN+ReLU+Dropout
                                   # layer1: ResidualBlock(32->64, Linear shortcut)
                                   # layer2: ResidualBlock(64->64, Identity shortcut)
    output_dim = 1
    batch = 8

    key = jax.random.PRNGKey(0)
    key, kx = jax.random.split(key)
    x = jax.random.normal(kx, (batch, input_dim), dtype=jnp.float32)

    layers = init_params(key, input_dim, hidden_layers, output_dim)
    model = build_model(layers, output_dim)

    out = mlp_forward(x, model)
    out = jax.block_until_ready(out)

    ref = mlp_forward_ref(x, layers)
    assert out.shape == (batch, output_dim), out.shape
    assert jnp.allclose(out, ref, atol=1e-5, rtol=1e-5), "mismatch vs reference"

    print("KERNEL_OK")
</pallas_src>

<mosaic_0001>
module attributes {stable_mosaic.version = 11 : i64} {
  func.func @kernel(%arg0: i32, %arg1: memref<8x128xf32, #tpu.memory_space<vmem>>, %arg2: memref<128x128xf32, #tpu.memory_space<vmem>>, %arg3: memref<1x128xf32, #tpu.memory_space<vmem>>, %arg4: memref<128x128xf32, #tpu.memory_space<vmem>>, %arg5: memref<1x128xf32, #tpu.memory_space<vmem>>, %arg6: memref<128x128xf32, #tpu.memory_space<vmem>>, %arg7: memref<1x128xf32, #tpu.memory_space<vmem>>, %arg8: memref<128x128xf32, #tpu.memory_space<vmem>>, %arg9: memref<1x128xf32, #tpu.memory_space<vmem>>, %arg10: memref<128x128xf32, #tpu.memory_space<vmem>>, %arg11: memref<1x128xf32, #tpu.memory_space<vmem>>, %arg12: memref<128x128xf32, #tpu.memory_space<vmem>>, %arg13: memref<1x128xf32, #tpu.memory_space<vmem>>, %arg14: memref<128x128xf32, #tpu.memory_space<vmem>>, %arg15: memref<1x128xf32, #tpu.memory_space<vmem>>, %arg16: memref<8x128xf32, #tpu.memory_space<vmem>>) attributes {dimension_semantics = [#tpu.dimension_semantics<parallel>], iteration_bounds = array<i64: 1>, scalar_prefetch = 0 : i64, scratch_operands = 0 : i64, tpu.core_type = #tpu.core_type<tc>, window_params = [{transform_indices = @transform_0, window_bounds = array<i64: 8, 128>}, {pipeline_mode = #tpu.pipeline_mode<synchronous>, transform_indices = @transform_1, window_bounds = array<i64: 128, 128>}, {pipeline_mode = #tpu.pipeline_mode<synchronous>, transform_indices = @transform_2, window_bounds = array<i64: 1, 128>}, {pipeline_mode = #tpu.pipeline_mode<synchronous>, transform_indices = @transform_3, window_bounds = array<i64: 128, 128>}, {pipeline_mode = #tpu.pipeline_mode<synchronous>, transform_indices = @transform_4, window_bounds = array<i64: 1, 128>}, {pipeline_mode = #tpu.pipeline_mode<synchronous>, transform_indices = @transform_5, window_bounds = array<i64: 128, 128>}, {pipeline_mode = #tpu.pipeline_mode<synchronous>, transform_indices = @transform_6, window_bounds = array<i64: 1, 128>}, {pipeline_mode = #tpu.pipeline_mode<synchronous>, transform_indices = @transform_7, window_bounds = array<i64: 128, 128>}, {pipeline_mode = #tpu.pipeline_mode<synchronous>, transform_indices = @transform_8, window_bounds = array<i64: 1, 128>}, {pipeline_mode = #tpu.pipeline_mode<synchronous>, transform_indices = @transform_9, window_bounds = array<i64: 128, 128>}, {pipeline_mode = #tpu.pipeline_mode<synchronous>, transform_indices = @transform_10, window_bounds = array<i64: 1, 128>}, {pipeline_mode = #tpu.pipeline_mode<synchronous>, transform_indices = @transform_11, window_bounds = array<i64: 128, 128>}, {pipeline_mode = #tpu.pipeline_mode<synchronous>, transform_indices = @transform_12, window_bounds = array<i64: 1, 128>}, {pipeline_mode = #tpu.pipeline_mode<synchronous>, transform_indices = @transform_13, window_bounds = array<i64: 128, 128>}, {pipeline_mode = #tpu.pipeline_mode<synchronous>, transform_indices = @transform_14, window_bounds = array<i64: 1, 128>}, {transform_indices = @transform_15, window_bounds = array<i64: 8, 128>}]} {
    %c0 = arith.constant 0 : index
    %c0_0 = arith.constant 0 : index
    %0 = vector.load %arg1[%c0, %c0_0] : memref<8x128xf32, #tpu.memory_space<vmem>>, vector<8x128xf32>
    %c0_1 = arith.constant 0 : index
    %c0_2 = arith.constant 0 : index
    %1 = vector.load %arg2[%c0_1, %c0_2] : memref<128x128xf32, #tpu.memory_space<vmem>>, vector<128x128xf32>
    %c0_3 = arith.constant 0 : index
    %c0_4 = arith.constant 0 : index
    %2 = vector.load %arg3[%c0_3, %c0_4] : memref<1x128xf32, #tpu.memory_space<vmem>>, vector<1x128xf32>
    %cst = arith.constant dense<0.000000e+00> : vector<8x128xf32>
    %3 = tpu.matmul %0, %1, %cst {dimension_numbers = #tpu.dot_dimension_numbers<[1], [0], [0], [1], [0, 0, 1, 1], [], []>} : vector<8x128xf32>, vector<128x128xf32>, vector<8x128xf32> -> vector<8x128xf32>
    %4 = vector.broadcast %2 : vector<1x128xf32> to vector<8x128xf32>
    %5 = arith.addf %3, %4 : vector<8x128xf32>
    %cst_5 = arith.constant 0.000000e+00 : f32
    %6 = vector.broadcast %cst_5 : f32 to vector<8x128xf32>
    %7 = arith.maximumf %5, %6 : vector<8x128xf32>
    %c0_6 = arith.constant 0 : index
    %c0_7 = arith.constant 0 : index
    %8 = vector.load %arg4[%c0_6, %c0_7] : memref<128x128xf32, #tpu.memory_space<vmem>>, vector<128x128xf32>
    %c0_8 = arith.constant 0 : index
    %c0_9 = arith.constant 0 : index
    %9 = vector.load %arg5[%c0_8, %c0_9] : memref<1x128xf32, #tpu.memory_space<vmem>>, vector<1x128xf32>
    %c0_10 = arith.constant 0 : index
    %c0_11 = arith.constant 0 : index
    %10 = vector.load %arg6[%c0_10, %c0_11] : memref<128x128xf32, #tpu.memory_space<vmem>>, vector<128x128xf32>
    %c0_12 = arith.constant 0 : index
    %c0_13 = arith.constant 0 : index
    %11 = vector.load %arg7[%c0_12, %c0_13] : memref<1x128xf32, #tpu.memory_space<vmem>>, vector<1x128xf32>
    %c0_14 = arith.constant 0 : index
    %c0_15 = arith.constant 0 : index
    %12 = vector.load %arg8[%c0_14, %c0_15] : memref<128x128xf32, #tpu.memory_space<vmem>>, vector<128x128xf32>
    %c0_16 = arith.constant 0 : index
    %c0_17 = arith.constant 0 : index
    %13 = vector.load %arg9[%c0_16, %c0_17] : memref<1x128xf32, #tpu.memory_space<vmem>>, vector<1x128xf32>
    %cst_18 = arith.constant dense<0.000000e+00> : vector<8x128xf32>
    %14 = tpu.matmul %7, %12, %cst_18 {dimension_numbers = #tpu.dot_dimension_numbers<[1], [0], [0], [1], [0, 0, 1, 1], [], []>} : vector<8x128xf32>, vector<128x128xf32>, vector<8x128xf32> -> vector<8x128xf32>
    %15 = vector.broadcast %13 : vector<1x128xf32> to vector<8x128xf32>
    %16 = arith.addf %14, %15 : vector<8x128xf32>
    %cst_19 = arith.constant dense<0.000000e+00> : vector<8x128xf32>
    %17 = tpu.matmul %7, %8, %cst_19 {dimension_numbers = #tpu.dot_dimension_numbers<[1], [0], [0], [1], [0, 0, 1, 1], [], []>} : vector<8x128xf32>, vector<128x128xf32>, vector<8x128xf32> -> vector<8x128xf32>
    %18 = vector.broadcast %9 : vector<1x128xf32> to vector<8x128xf32>
    %19 = arith.addf %17, %18 : vector<8x128xf32>
    %cst_20 = arith.constant 0.000000e+00 : f32
    %20 = vector.broadcast %cst_20 : f32 to vector<8x128xf32>
    %21 = arith.maximumf %19, %20 : vector<8x128xf32>
    %cst_21 = arith.constant dense<0.000000e+00> : vector<8x128xf32>
    %22 = tpu.matmul %21, %10, %cst_21 {dimension_numbers = #tpu.dot_dimension_numbers<[1], [0], [0], [1], [0, 0, 1, 1], [], []>} : vector<8x128xf32>, vector<128x128xf32>, vector<8x128xf32> -> vector<8x128xf32>
    %23 = vector.broadcast %11 : vector<1x128xf32> to vector<8x128xf32>
    %24 = arith.addf %22, %23 : vector<8x128xf32>
    %25 = arith.addf %24, %16 : vector<8x128xf32>
    %cst_22 = arith.constant 0.000000e+00 : f32
    %26 = vector.broadcast %cst_22 : f32 to vector<8x128xf32>
    %27 = arith.maximumf %25, %26 : vector<8x128xf32>
    %c0_23 = arith.constant 0 : index
    %c0_24 = arith.constant 0 : index
    %28 = vector.load %arg10[%c0_23, %c0_24] : memref<128x128xf32, #tpu.memory_space<vmem>>, vector<128x128xf32>
    %c0_25 = arith.constant 0 : index
    %c0_26 = arith.constant 0 : index
    %29 = vector.load %arg11[%c0_25, %c0_26] : memref<1x128xf32, #tpu.memory_space<vmem>>, vector<1x128xf32>
    %c0_27 = arith.constant 0 : index
    %c0_28 = arith.constant 0 : index
    %30 = vector.load %arg12[%c0_27, %c0_28] : memref<128x128xf32, #tpu.memory_space<vmem>>, vector<128x128xf32>
    %c0_29 = arith.constant 0 : index
    %c0_30 = arith.constant 0 : index
    %31 = vector.load %arg13[%c0_29, %c0_30] : memref<1x128xf32, #tpu.memory_space<vmem>>, vector<1x128xf32>
    %cst_31 = arith.constant dense<0.000000e+00> : vector<8x128xf32>
    %32 = tpu.matmul %27, %28, %cst_31 {dimension_numbers = #tpu.dot_dimension_numbers<[1], [0], [0], [1], [0, 0, 1, 1], [], []>} : vector<8x128xf32>, vector<128x128xf32>, vector<8x128xf32> -> vector<8x128xf32>
    %33 = vector.broadcast %29 : vector<1x128xf32> to vector<8x128xf32>
    %34 = arith.addf %32, %33 : vector<8x128xf32>
    %cst_32 = arith.constant 0.000000e+00 : f32
    %35 = vector.broadcast %cst_32 : f32 to vector<8x128xf32>
    %36 = arith.maximumf %34, %35 : vector<8x128xf32>
    %cst_33 = arith.constant dense<0.000000e+00> : vector<8x128xf32>
    %37 = tpu.matmul %36, %30, %cst_33 {dimension_numbers = #tpu.dot_dimension_numbers<[1], [0], [0], [1], [0, 0, 1, 1], [], []>} : vector<8x128xf32>, vector<128x128xf32>, vector<8x128xf32> -> vector<8x128xf32>
    %38 = vector.broadcast %31 : vector<1x128xf32> to vector<8x128xf32>
    %39 = arith.addf %37, %38 : vector<8x128xf32>
    %40 = arith.addf %39, %27 : vector<8x128xf32>
    %cst_34 = arith.constant 0.000000e+00 : f32
    %41 = vector.broadcast %cst_34 : f32 to vector<8x128xf32>
    %42 = arith.maximumf %40, %41 : vector<8x128xf32>
    %c0_35 = arith.constant 0 : index
    %c0_36 = arith.constant 0 : index
    %43 = vector.load %arg14[%c0_35, %c0_36] : memref<128x128xf32, #tpu.memory_space<vmem>>, vector<128x128xf32>
    %c0_37 = arith.constant 0 : index
    %c0_38 = arith.constant 0 : index
    %44 = vector.load %arg15[%c0_37, %c0_38] : memref<1x128xf32, #tpu.memory_space<vmem>>, vector<1x128xf32>
    %cst_39 = arith.constant dense<0.000000e+00> : vector<8x128xf32>
    %45 = tpu.matmul %42, %43, %cst_39 {dimension_numbers = #tpu.dot_dimension_numbers<[1], [0], [0], [1], [0, 0, 1, 1], [], []>} : vector<8x128xf32>, vector<128x128xf32>, vector<8x128xf32> -> vector<8x128xf32>
    %46 = vector.broadcast %44 : vector<1x128xf32> to vector<8x128xf32>
    %47 = arith.addf %45, %46 : vector<8x128xf32>
    %c0_40 = arith.constant 0 : index
    %c0_41 = arith.constant 0 : index
    %48 = vector.load %arg16[%c0_40, %c0_41] : memref<8x128xf32, #tpu.memory_space<vmem>>, vector<8x128xf32>
    tpu.vector_store %arg16[%c0_40, %c0_41], %47 {strides = array<i32>} : memref<8x128xf32, #tpu.memory_space<vmem>>, vector<8x128xf32>,
    return
  }
  func.func @transform_0(%arg0: i32) -> (i32, i32) {
    %c0_i32 = arith.constant 0 : i32
    %c0_i32_0 = arith.constant 0 : i32
    return %arg0, %c0_i32 : i32, i32
  }
  func.func @transform_1(%arg0: i32) -> (i32, i32) {
    %c0_i32 = arith.constant 0 : i32
    %c0_i32_0 = arith.constant 0 : i32
    %c0_i32_1 = arith.constant 0 : i32
    return %c0_i32, %c0_i32_0 : i32, i32
  }
  func.func @transform_2(%arg0: i32) -> (i32, i32) {
    %c0_i32 = arith.constant 0 : i32
    %c0_i32_0 = arith.constant 0 : i32
    %c0_i32_1 = arith.constant 0 : i32
    return %c0_i32, %c0_i32_0 : i32, i32
  }
  func.func @transform_3(%arg0: i32) -> (i32, i32) {
    %c0_i32 = arith.constant 0 : i32
    %c0_i32_0 = arith.constant 0 : i32
    %c0_i32_1 = arith.constant 0 : i32
    return %c0_i32, %c0_i32_0 : i32, i32
  }
  func.func @transform_4(%arg0: i32) -> (i32, i32) {
    %c0_i32 = arith.constant 0 : i32
    %c0_i32_0 = arith.constant 0 : i32
    %c0_i32_1 = arith.constant 0 : i32
    return %c0_i32, %c0_i32_0 : i32, i32
  }
  func.func @transform_5(%arg0: i32) -> (i32, i32) {
    %c0_i32 = arith.constant 0 : i32
    %c0_i32_0 = arith.constant 0 : i32
    %c0_i32_1 = arith.constant 0 : i32
    return %c0_i32, %c0_i32_0 : i32, i32
  }
  func.func @transform_6(%arg0: i32) -> (i32, i32) {
    %c0_i32 = arith.constant 0 : i32
    %c0_i32_0 = arith.constant 0 : i32
    %c0_i32_1 = arith.constant 0 : i32
    return %c0_i32, %c0_i32_0 : i32, i32
  }
  func.func @transform_7(%arg0: i32) -> (i32, i32) {
    %c0_i32 = arith.constant 0 : i32
    %c0_i32_0 = arith.constant 0 : i32
    %c0_i32_1 = arith.constant 0 : i32
    return %c0_i32, %c0_i32_0 : i32, i32
  }
  func.func @transform_8(%arg0: i32) -> (i32, i32) {
    %c0_i32 = arith.constant 0 : i32
    %c0_i32_0 = arith.constant 0 : i32
    %c0_i32_1 = arith.constant 0 : i32
    return %c0_i32, %c0_i32_0 : i32, i32
  }
  func.func @transform_9(%arg0: i32) -> (i32, i32) {
    %c0_i32 = arith.constant 0 : i32
    %c0_i32_0 = arith.constant 0 : i32
    %c0_i32_1 = arith.constant 0 : i32
    return %c0_i32, %c0_i32_0 : i32, i32
  }
  func.func @transform_10(%arg0: i32) -> (i32, i32) {
    %c0_i32 = arith.constant 0 : i32
    %c0_i32_0 = arith.constant 0 : i32
    %c0_i32_1 = arith.constant 0 : i32
    return %c0_i32, %c0_i32_0 : i32, i32
  }
  func.func @transform_11(%arg0: i32) -> (i32, i32) {
    %c0_i32 = arith.constant 0 : i32
    %c0_i32_0 = arith.constant 0 : i32
    %c0_i32_1 = arith.constant 0 : i32
    return %c0_i32, %c0_i32_0 : i32, i32
  }
  func.func @transform_12(%arg0: i32) -> (i32, i32) {
    %c0_i32 = arith.constant 0 : i32
    %c0_i32_0 = arith.constant 0 : i32
    %c0_i32_1 = arith.constant 0 : i32
    return %c0_i32, %c0_i32_0 : i32, i32
  }
  func.func @transform_13(%arg0: i32) -> (i32, i32) {
    %c0_i32 = arith.constant 0 : i32
    %c0_i32_0 = arith.constant 0 : i32
    %c0_i32_1 = arith.constant 0 : i32
    return %c0_i32, %c0_i32_0 : i32, i32
  }
  func.func @transform_14(%arg0: i32) -> (i32, i32) {
    %c0_i32 = arith.constant 0 : i32
    %c0_i32_0 = arith.constant 0 : i32
    %c0_i32_1 = arith.constant 0 : i32
    return %c0_i32, %c0_i32_0 : i32, i32
  }
  func.func @transform_15(%arg0: i32) -> (i32, i32) {
    %c0_i32 = arith.constant 0 : i32
    %c0_i32_0 = arith.constant 0 : i32
    return %arg0, %c0_i32 : i32, i32
  }
}

</mosaic_0001>

<bundles_post_ra>
// kernel: tpu_custom_call.1
= control target key start
LH: loop header
LB: loop body
LE: loop exit
PB: predicated region body
PF: predicated region fallthrough
CT: control target
= control target key end

     0   :  { %s1918_s0 = inlined_call_operand.hbm [shape: f32[8,128], index: 0, kind: input, shape index: {}]   ;;  %s1919_s1 = inlined_call_operand.hbm [shape: f32[128,128], index: 1, kind: input, shape index: {}]   ;;  %s1920_s2 = inlined_call_operand.vmem [shape: f32[1,128], index: 2, kind: input, shape index: {}]   ;;  %s1921_s3 = inlined_call_operand.hbm [shape: f32[128,128], index: 3, kind: input, shape index: {}]   ;;  %s1922_s4 = inlined_call_operand.vmem [shape: f32[1,128], index: 4, kind: input, shape index: {}]   ;;  %s1923_s5 = inlined_call_operand.hbm [shape: f32[128,128], index: 5, kind: input, shape index: {}]   ;;  %s1924_s6 = inlined_call_operand.vmem [shape: f32[1,128], index: 6, kind: input, shape index: {}]   ;;  %s1925_s7 = inlined_call_operand.hbm [shape: f32[128,128], index: 7, kind: input, shape index: {}]   ;;  %s1926_s8 = inlined_call_operand.vmem [shape: f32[1,128], index: 8, kind: input, shape index: {}]   ;;  %s1927_s9 = inlined_call_operand.hbm [shape: f32[128,128], index: 9, kind: input, shape index: {}]   ;;  %s1928_s10 = inlined_call_operand.vmem [shape: f32[1,128], index: 10, kind: input, shape index: {}]   ;;  %s1929_s11 = inlined_call_operand.hbm [shape: f32[128,128], index: 11, kind: input, shape index: {}]   ;;  %s1930_s12 = inlined_call_operand.vmem [shape: f32[1,128], index: 12, kind: input, shape index: {}]   ;;  %s1931_s13 = inlined_call_operand.hbm [shape: f32[128,128], index: 13, kind: input, shape index: {}]   ;;  %s1932_s14 = inlined_call_operand.vmem [shape: f32[1,128], index: 14, kind: input, shape index: {}]   ;;  %s1933_s15 = inlined_call_operand.hbm [shape: f32[8,128], index: 15, kind: output, shape index: {}]  }
   0x1   :  { %1935 = sst [smem:[#allocation23_spill]] %s1933_s15 }
   0x2   :  { %20 = vsyncpa [#allocation3], 0 }
   0x3   :  { %21 = vsyncpa [#allocation6], 0 }
   0x4   :  { %22 = vsyncpa [#allocation9], 0 }
   0x5   :  { %23 = vsyncpa [#allocation12], 0 }
   0x6   :  { %24 = vsyncpa [#allocation15], 0 }
   0x7   :  { %25 = vsyncpa [#allocation4], 0  ;;  %s1604_s18 = smov [#allocation5]   ;;  %s1394_s22 = scalar_lea.hbm %s1919_s1, 2048 }
   0x8   :  { %s41_s19 = sshll.u32 %s1604_s18, 4  ;;  %p1395_p0 = scmp.ne.s32.totalorder %s1919_s1, %s1394_s22  ;;  %s42_s19 = int_to_ptr.vmem [resolvable:$true] %s41_s19 }
   0x9   :  { %p1398_p1 = scmp.lt.u32.totalorder %s1394_s22, %s1919_s1 }
   0xb   :  { %p1400_p2 = pnand %p1398_p1, %p1395_p0 }
   0xd   :  { %1403 = shalt.err (!%p1400_p2)
}
   0xe   :  { %s1404_s27 = scalar_lea.vmem %s42_s19, 2048  ;;  %p1409_p4 = scmp.lt.s32.totalorder %s42_s19, %s42_s19 }
   0xf   :  { %p1405_p3 = scmp.ne.s32.totalorder %s42_s19, %s1404_s27  ;;  %p1410_p5 = scmp.lt.s32.totalorder %s1404_s27, %s1404_s27 }
  0x11   :  { %p1411_p6 = por %p1410_p5, %p1409_p4 }
  0x13   :  { %p1412_p7 = pnand %p1411_p6, %p1405_p3 }
  0x15   :  { %1415 = shalt.err (!%p1412_p7)
}
  0x16   :  { %s1605_s28 = smov 128   ;;  %s1606_s29 = smov 8  }
  0x17   :  { %47 = dma.hbm_to_vmem [thread:$0]  %s1919_s1, 2048, %s42_s19, [#allocation6], %s1605_s28, %s1605_s28, %s1606_s29  }
  0x18   :  { %s1607_s17 = smov [#allocation8]   ;;  %s1608_s20 = smov [#allocation11]  }
  0x19   :  { %s69_s18 = sshll.u32 %s1607_s17, 4  ;;  %s97_s21 = sshll.u32 %s1608_s20, 4  ;;  %s70_s18 = int_to_ptr.vmem [resolvable:$true] %s69_s18  ;;  %s98_s21 = int_to_ptr.vmem [resolvable:$true] %s97_s21 }
  0x1a   :  { %s1416_s24 = scalar_lea.hbm %s1923_s5, 2048 }
  0x1b   :  { %p1417_p8 = scmp.ne.s32.totalorder %s1923_s5, %s1416_s24  ;;  %p1420_p9 = scmp.lt.u32.totalorder %s1416_s24, %s1923_s5 }
  0x1d   :  { %p1422_p10 = pnand %p1420_p9, %p1417_p8 }
  0x1f   :  { %1425 = shalt.err (!%p1422_p10)
}
  0x20   :  { %s1426_s1 = scalar_lea.vmem %s70_s18, 2048  ;;  %p1431_p12 = scmp.lt.s32.totalorder %s70_s18, %s70_s18 }
  0x21   :  { %p1427_p11 = scmp.ne.s32.totalorder %s70_s18, %s1426_s1  ;;  %p1432_p13 = scmp.lt.s32.totalorder %s1426_s1, %s1426_s1 }
  0x23   :  { %p1433_p0 = por %p1432_p13, %p1431_p12 }
  0x25   :  { %p1434_p1 = pnand %p1433_p0, %p1427_p11 }
  0x27   :  { %1437 = shalt.err (!%p1434_p1)
}
  0x28   :  { %75 = dma.hbm_to_vmem [thread:$0]  %s1923_s5, 2048, %s70_s18, [#allocation9], %s1605_s28, %s1605_s28, %s1606_s29  }
  0x29   :  { %s1438_s17 = scalar_lea.hbm %s1927_s9, 2048 }
  0x2a   :  { %p1439_p2 = scmp.ne.s32.totalorder %s1927_s9, %s1438_s17  ;;  %p1442_p3 = scmp.lt.u32.totalorder %s1438_s17, %s1927_s9 }
  0x2c   :  { %p1444_p4 = pnand %p1442_p3, %p1439_p2 }
  0x2e   :  { %1447 = shalt.err (!%p1444_p4)
}
  0x2f   :  { %s1448_s25 = scalar_lea.vmem %s98_s21, 2048  ;;  %p1453_p6 = scmp.lt.s32.totalorder %s98_s21, %s98_s21 }
  0x30   :  { %p1449_p5 = scmp.ne.s32.totalorder %s98_s21, %s1448_s25  ;;  %p1454_p7 = scmp.lt.s32.totalorder %s1448_s25, %s1448_s25 }
  0x32   :  { %p1455_p8 = por %p1454_p7, %p1453_p6 }
  0x34   :  { %p1456_p9 = pnand %p1455_p8, %p1449_p5 }
  0x36   :  { %1459 = shalt.err (!%p1456_p9)
}
  0x37   :  { %103 = dma.hbm_to_vmem [thread:$0]  %s1927_s9, 2048, %s98_s21, [#allocation12], %s1605_s28, %s1605_s28, %s1606_s29  }
  0x38   :  { %s1609_s26 = smov [#allocation2]   ;;  %s1610_s1 = smov [#allocation7]  }
  0x39   :  { %s32_s27 = sshll.u32 %s1609_s26, 4  ;;  %s55_s19 = sshll.u32 %s1610_s1, 4  ;;  %s33_s27 = int_to_ptr.vmem [resolvable:$true] %s32_s27  ;;  %s56_s19 = int_to_ptr.vmem [resolvable:$true] %s55_s19 }
  0x3a   :  { %s1460_s15 = scalar_lea.hbm %s1918_s0, 128 }
  0x3b   :  { %p1461_p10 = scmp.ne.s32.totalorder %s1918_s0, %s1460_s15  ;;  %p1464_p11 = scmp.lt.u32.totalorder %s1460_s15, %s1918_s0 }
  0x3d   :  { %p1466_p12 = pnand %p1464_p11, %p1461_p10 }
  0x3f   :  { %1469 = shalt.err (!%p1466_p12)
}
  0x40   :  { %s1470_s9 = scalar_lea.vmem %s33_s27, 128  ;;  %p1475_p0 = scmp.lt.s32.totalorder %s33_s27, %s33_s27 }
  0x41   :  { %p1471_p13 = scmp.ne.s32.totalorder %s33_s27, %s1470_s9  ;;  %p1476_p1 = scmp.lt.s32.totalorder %s1470_s9, %s1470_s9 }
  0x43   :  { %p1477_p2 = por %p1476_p1, %p1475_p0 }
  0x45   :  { %p1478_p3 = pnand %p1477_p2, %p1471_p13 }
  0x47   :  { %1481 = shalt.err (!%p1478_p3)
}
  0x48   :  { %35 = dma.hbm_to_vmem [thread:$0]  %s1918_s0, 128, %s33_s27, [#allocation3]  }
  0x49   :  { %s1482_s18 = scalar_lea.hbm %s1921_s3, 2048 }
  0x4a   :  { %p1483_p4 = scmp.ne.s32.totalorder %s1921_s3, %s1482_s18  ;;  %p1486_p5 = scmp.lt.u32.totalorder %s1482_s18, %s1921_s3 }
  0x4c   :  { %p1488_p6 = pnand %p1486_p5, %p1483_p4 }
  0x4e   :  { %1491 = shalt.err (!%p1488_p6)
}
  0x4f   :  { %s1492_s15 = scalar_lea.vmem %s56_s19, 2048  ;;  %p1497_p8 = scmp.lt.s32.totalorder %s56_s19, %s56_s19 }
  0x50   :  { %p1493_p7 = scmp.ne.s32.totalorder %s56_s19, %s1492_s15  ;;  %p1498_p9 = scmp.lt.s32.totalorder %s1492_s15, %s1492_s15 }
  0x52   :  { %p1499_p10 = por %p1498_p9, %p1497_p8 }
  0x54   :  { %p1500_p11 = pnand %p1499_p10, %p1493_p7 }
  0x56   :  { %1503 = shalt.err (!%p1500_p11)
}
  0x57   :  { %61 = dma.hbm_to_vmem [thread:$0]  %s1921_s3, 2048, %s56_s19, [#allocation6], %s1605_s28, %s1605_s28, %s1606_s29  }
  0x58   :  { %s1611_s17 = smov [#allocation10]   ;;  %s1612_s22 = smov [#allocation13]  }
  0x59   :  { %s83_s20 = sshll.u32 %s1611_s17, 4  ;;  %s111_s23 = sshll.u32 %s1612_s22, 4  ;;  %s84_s20 = int_to_ptr.vmem [resolvable:$true] %s83_s20  ;;  %s112_s23 = int_to_ptr.vmem [resolvable:$true] %s111_s23 }
  0x5a   :  { %s1504_s24 = scalar_lea.hbm %s1925_s7, 2048 }
  0x5b   :  { %p1505_p12 = scmp.ne.s32.totalorder %s1925_s7, %s1504_s24  ;;  %p1508_p13 = scmp.lt.u32.totalorder %s1504_s24, %s1925_s7 }
  0x5d   :  { %p1510_p0 = pnand %p1508_p13, %p1505_p12 }
  0x5f   :  { %1513 = shalt.err (!%p1510_p0)
}
  0x60   :  { %s1514_s3 = scalar_lea.vmem %s84_s20, 2048  ;;  %p1519_p2 = scmp.lt.s32.totalorder %s84_s20, %s84_s20 }
  0x61   :  { %p1515_p1 = scmp.ne.s32.totalorder %s84_s20, %s1514_s3  ;;  %p1520_p3 = scmp.lt.s32.totalorder %s1514_s3, %s1514_s3 }
  0x63   :  { %p1521_p4 = por %p1520_p3, %p1519_p2 }
  0x65   :  { %p1522_p5 = pnand %p1521_p4, %p1515_p1 }
  0x67   :  { %1525 = shalt.err (!%p1522_p5)
}
  0x68   :  { %89 = dma.hbm_to_vmem [thread:$0]  %s1925_s7, 2048, %s84_s20, [#allocation9], %s1605_s28, %s1605_s28, %s1606_s29  }
  0x69   :  { %s1526_s15 = scalar_lea.hbm %s1929_s11, 2048 }
  0x6a   :  { %p1527_p6 = scmp.ne.s32.totalorder %s1929_s11, %s1526_s15  ;;  %p1530_p7 = scmp.lt.u32.totalorder %s1526_s15, %s1929_s11 }
  0x6c   :  { %p1532_p8 = pnand %p1530_p7, %p1527_p6 }
  0x6e   :  { %1535 = shalt.err (!%p1532_p8)
}
  0x6f   :  { %s1536_s9 = scalar_lea.vmem %s112_s23, 2048  ;;  %p1541_p10 = scmp.lt.s32.totalorder %s112_s23, %s112_s23 }
  0x70   :  { %p1537_p9 = scmp.ne.s32.totalorder %s112_s23, %s1536_s9  ;;  %p1542_p11 = scmp.lt.s32.totalorder %s1536_s9, %s1536_s9 }
  0x72   :  { %p1543_p12 = por %p1542_p11, %p1541_p10 }
  0x74   :  { %p1544_p13 = pnand %p1543_p12, %p1537_p9 }
  0x76   :  { %1547 = shalt.err (!%p1544_p13)
}
  0x77   :  { %117 = dma.hbm_to_vmem [thread:$0]  %s1929_s11, 2048, %s112_s23, [#allocation12], %s1605_s28, %s1605_s28, %s1606_s29  }
  0x78   :  { %s1613_s21 = smov [#allocation14]   ;;  %s1548_s18 = scalar_lea.hbm %s1931_s13, 2048 }
  0x79   :  { %s125_s24 = sshll.u32 %s1613_s21, 4  ;;  %p1549_p0 = scmp.ne.s32.totalorder %s1931_s13, %s1548_s18  ;;  %s126_s24 = int_to_ptr.vmem [resolvable:$true] %s125_s24 }
  0x7a   :  { %p1552_p1 = scmp.lt.u32.totalorder %s1548_s18, %s1931_s13 }
  0x7c   :  { %p1554_p2 = pnand %p1552_p1, %p1549_p0 }
  0x7e   :  { %1557 = shalt.err (!%p1554_p2)
}
  0x7f   :  { %s1558_s30 = scalar_lea.vmem %s126_s24, 2048  ;;  %p1563_p4 = scmp.lt.s32.totalorder %s126_s24, %s126_s24 }
  0x80   :  { %p1559_p3 = scmp.ne.s32.totalorder %s126_s24, %s1558_s30  ;;  %p1564_p5 = scmp.lt.s32.totalorder %s1558_s30, %s1558_s30 }
  0x82   :  { %p1565_p6 = por %p1564_p5, %p1563_p4 }
  0x84   :  { %p1566_p7 = pnand %p1565_p6, %p1559_p3 }
  0x86   :  { %1569 = shalt.err (!%p1566_p7)
}
  0x87   :  { %131 = dma.hbm_to_vmem [thread:$0]  %s1931_s13, 2048, %s126_s24, [#allocation15], %s1605_s28, %s1605_s28, %s1606_s29  }
  0x88   :  { %1592 = dma.done.wait [#allocation3], 128  }
  0x89   :  { %1593 = vsyncadd [#allocation3], 4294967168 }
  0x8a   :  { %1594 = dma.done.wait [#allocation6], 4096  }
  0x8b   :  { %1595 = vsyncadd [#allocation6], 4294963200 }
  0x8c   :  { %1596 = dma.done.wait [#allocation9], 4096  }
  0x8d   :  { %1597 = vsyncadd [#allocation9], 4294963200 }
  0x8e   :  { %1598 = dma.done.wait [#allocation12], 4096  }
  0x8f   :  { %1599 = vsyncadd [#allocation12], 4294963200 }
  0x90   :  { %1600 = dma.done.wait [#allocation15], 2048  }
  0x91   :  { %1601 = vsyncadd [#allocation15], 4294965248  ;;  %v1614_v0 = vmov 0.0|0.0   ;;  %vm1615_vm0 = vmmov 0   ;;  %v1616_v1 = vmov 0.0   ;;  %v159_v2 = vld [vmem:[#allocation5] sm:$0xff] }
  0x92   :  { %1208 = vmatprep.subr.bf16.mxu0 %v1614_v0  ;;  %995 = vmatprep.mubr.msk.f32.mxu0 %vm1615_vm0, %v1616_v1  ;;  %v160_v3 = vld [vmem:[#allocation5 + $0x8] sm:$0xff]  ;;  %v161_v4 = vld [vmem:[#allocation5 + $0x10] sm:$0xff]  ;;  %v162_v6 = vld [vmem:[#allocation5 + $0x18] sm:$0xff]  ;;  %s1617_s9 = smov [#allocation16]  }
  0x93   :  { %1232 = vmatprep.subr.bf16.mxu1 %v1614_v0  ;;  %1030 = vmatprep.mubr.msk.f32.mxu1 %vm1615_vm0, %v1616_v1  ;;  %v1209_v5 = vpack.c.bf16 %v160_v3, %v159_v2  ;;  %v1212_v7 = vpack.c.bf16 %v162_v6, %v161_v4  ;;  %v163_v8 = vld [vmem:[#allocation5 + $0x20] sm:$0xff]  ;;  %v164_v9 = vld [vmem:[#allocation5 + $0x28] sm:$0xff]  ;;  %v289_v14 = vld [vmem:[#allocation10 + $0x10] sm:$0xff]  ;;  %s824_s7 = sshll.u32 %s1617_s9, 4  ;;  %s825_s7 = int_to_ptr.vmem [resolvable:$true] %s824_s7 }
  0x94   :  { %v287_v10 = vld [vmem:[#allocation10] sm:$0xff]  ;;  %v288_v11 = vld [vmem:[#allocation10 + $0x8] sm:$0xff]  ;;  %v1215_v12 = vpack.c.bf16 %v164_v9, %v163_v8  ;;  %v290_v15 = vld [vmem:[#allocation10 + $0x18] sm:$0xff]  ;;  %s1570_s20 = scalar_lea.vmem %s825_s7, 128  ;;  %p1575_p9 = scmp.lt.s32.totalorder %s825_s7, %s825_s7 }
  0x95   :  { %1210 = vmatpush3.bf16.msra.mxu0 %v1209_v5  ;;  %v1233_v13 = vpack.c.bf16 %v288_v11, %v287_v10  ;;  %v165_v16 = vld [vmem:[#allocation5 + $0x30] sm:$0xff]  ;;  %v166_v17 = vld [vmem:[#allocation5 + $0x38] sm:$0xff]  ;;  %v1236_v18 = vpack.c.bf16 %v290_v15, %v289_v14  ;;  %v291_v19 = vld [vmem:[#allocation10 + $0x20] sm:$0xff]  ;;  %p1571_p8 = scmp.ne.s32.totalorder %s825_s7, %s1570_s20  ;;  %p1576_p10 = scmp.lt.s32.totalorder %s1570_s20, %s1570_s20 }
  0x96   :  { %1211 = vmatprep.subr.bf16.mxu0 %v1614_v0  ;;  %v292_v20 = vld [vmem:[#allocation10 + $0x28] sm:$0xff]  ;;  %v1218_v21 = vpack.c.bf16 %v166_v17, %v165_v16  ;;  %v167_v22 = vld [vmem:[#allocation5 + $0x40] sm:$0xff]  ;;  %v293_v25 = vld [vmem:[#allocation10 + $0x30] sm:$0xff] }
  0x97   :  { %1234 = vmatpush3.bf16.msra.mxu1 %v1233_v13  ;;  %v168_v23 = vld [vmem:[#allocation5 + $0x48] sm:$0xff]  ;;  %v1239_v24 = vpack.c.bf16 %v292_v20, %v291_v19  ;;  %v294_v26 = vld [vmem:[#allocation10 + $0x38] sm:$0xff]  ;;  %v169_v28 = vld [vmem:[#allocation5 + $0x50] sm:$0xff]  ;;  %p1577_p11 = por %p1576_p10, %p1575_p9 }
  0x98   :  { %1235 = vmatprep.subr.bf16.mxu1 %v1614_v0  ;;  %v1221_v27 = vpack.c.bf16 %v168_v23, %v167_v22  ;;  %v170_v29 = vld [vmem:[#allocation5 + $0x58] sm:$0xff]  ;;  %v1242_v30 = vpack.c.bf16 %v294_v26, %v293_v25  ;;  %v295_v31 = vld [vmem:[#allocation10 + $0x40] sm:$0xff]  ;;  %v296_v32 = vld [vmem:[#allocation10 + $0x48] sm:$0xff] }
  0x99   :  { %1213 = vmatpush3.bf16.msra.mxu0 %v1212_v7  ;;  %v1224_v33 = vpack.c.bf16 %v170_v29, %v169_v28  ;;  %v171_v34 = vld [vmem:[#allocation5 + $0x60] sm:$0xff]  ;;  %v172_v35 = vld [vmem:[#allocation5 + $0x68] sm:$0xff]  ;;  %v1245_v36 = vpack.c.bf16 %v296_v32, %v295_v31  ;;  %v297_v37 = vld [vmem:[#allocation10 + $0x50] sm:$0xff]  ;;  %p1578_p12 = pnand %p1577_p11, %p1571_p8 }
  0x9a   :  { %1214 = vmatprep.subr.bf16.mxu0 %v1614_v0  ;;  %v298_v38 = vld [vmem:[#allocation10 + $0x58] sm:$0xff]  ;;  %v1227_v39 = vpack.c.bf16 %v172_v35, %v171_v34  ;;  %v173_v40 = vld [vmem:[#allocation5 + $0x70] sm:$0xff]  ;;  %v299_v43 = vld [vmem:[#allocation10 + $0x60] sm:$0xff] }
  0x9b   :  { %1237 = vmatpush3.bf16.msra.mxu1 %v1236_v18  ;;  %v174_v41 = vld [vmem:[#allocation5 + $0x78] sm:$0xff]  ;;  %v1248_v42 = vpack.c.bf16 %v298_v38, %v297_v37  ;;  %v300_v44 = vld [vmem:[#allocation10 + $0x68] sm:$0xff]  ;;  %v253_v46 = vld [vmem:[#allocation7] sm:$0xff] }
  0x9c   :  { %1238 = vmatprep.subr.bf16.mxu1 %v1614_v0  ;;  %v1230_v45 = vpack.c.bf16 %v174_v41, %v173_v40  ;;  %v254_v47 = vld [vmem:[#allocation7 + $0x8] sm:$0xff]  ;;  %v1251_v48 = vpack.c.bf16 %v300_v44, %v299_v43  ;;  %v158_v49 = vld [vmem:[#allocation2] sm:$0xff]  ;;  %v255_v51 = vld [vmem:[#allocation7 + $0x10] sm:$0xff] }
  0x9d   :  { %1216 = vmatpush3.bf16.msra.mxu0 %v1215_v12  ;;  %v1257_v50 = vpack.c.bf16 %v254_v47, %v253_v46  ;;  %v256_v52 = vld [vmem:[#allocation7 + $0x18] sm:$0xff]  ;;  %v257_v54 = vld [vmem:[#allocation7 + $0x20] sm:$0xff]  ;;  %v258_v55 = vld [vmem:[#allocation7 + $0x28] sm:$0xff] }
  0x9e   :  { %1217 = vmatprep.subr.bf16.mxu0 %v1614_v0  ;;  %v1260_v53 = vpack.c.bf16 %v256_v52, %v255_v51  ;;  %v1263_v56 = vpack.c.bf16 %v258_v55, %v257_v54  ;;  %v259_v57 = vld [vmem:[#allocation7 + $0x30] sm:$0xff]  ;;  %v260_v58 = vld [vmem:[#allocation7 + $0x38] sm:$0xff]  ;;  %v261_v60 = vld [vmem:[#allocation7 + $0x40] sm:$0xff] }
  0x9f   :  { %1240 = vmatpush3.bf16.msra.mxu1 %v1239_v24  ;;  %v1266_v59 = vpack.c.bf16 %v260_v58, %v259_v57  ;;  %v262_v61 = vld [vmem:[#allocation7 + $0x48] sm:$0xff]  ;;  %v263_v63 = vld [vmem:[#allocation7 + $0x50] sm:$0xff]  ;;  %v264_v2 = vld [vmem:[#allocation7 + $0x58] sm:$0xff] }
  0xa0   :  { %1241 = vmatprep.subr.bf16.mxu1 %v1614_v0  ;;  %v1269_v62 = vpack.c.bf16 %v262_v61, %v261_v60  ;;  %v1272_v3 = vpack.c.bf16 %v264_v2, %v263_v63  ;;  %v265_v4 = vld [vmem:[#allocation7 + $0x60] sm:$0xff]  ;;  %v266_v5 = vld [vmem:[#allocation7 + $0x68] sm:$0xff]  ;;  %v301_v7 = vld [vmem:[#allocation10 + $0x70] sm:$0xff] }
  0xa1   :  { %1219 = vmatpush3.bf16.msra.mxu0 %v1218_v21  ;;  %v1275_v6 = vpack.c.bf16 %v266_v5, %v265_v4  ;;  %v302_v8 = vld [vmem:[#allocation10 + $0x78] sm:$0xff]  ;;  %v267_v9 = vld [vmem:[#allocation7 + $0x70] sm:$0xff]  ;;  %v270_v14 = vld [vmem:[#allocation8] sm:$0xff] }
  0xa2   :  { %1220 = vmatprep.subr.bf16.mxu0 %v1614_v0  ;;  %v1254_v10 = vpack.c.bf16 %v302_v8, %v301_v7  ;;  %v268_v11 = vld [vmem:[#allocation7 + $0x78] sm:$0xff]  ;;  %v271_v15 = vld [vmem:[#allocation8 + $0x8] sm:$0xff]  ;;  %v272_v21 = vld [vmem:[#allocation8 + $0x10] sm:$0xff] }
  0xa3   :  { %1243 = vmatpush3.bf16.msra.mxu1 %v1242_v30  ;;  %v1278_v12 = vpack.c.bf16 %v268_v11, %v267_v9  ;;  %v837_v13 = vld [vmem:[%s1920_s2] ss:$0 sm:$0xff]  ;;  %v1281_v19 = vpack.c.bf16 %v271_v15, %v270_v14  ;;  %v274_v24 = vld [vmem:[#allocation8 + $0x20] sm:$0xff]  ;;  %v275_v25 = vld [vmem:[#allocation8 + $0x28] sm:$0xff] }
  0xa4   :  { %1244 = vmatprep.subr.bf16.mxu1 %v1614_v0  ;;  %v273_v22 = vld [vmem:[#allocation8 + $0x18] sm:$0xff]  ;;  %v1287_v26 = vpack.c.bf16 %v275_v25, %v274_v24  ;;  %v278_v30 = vld [vmem:[#allocation8 + $0x40] sm:$0xff]  ;;  %v279_v31 = vld [vmem:[#allocation8 + $0x48] sm:$0xff] }
  0xa5   :  { %1222 = vmatpush3.bf16.msra.mxu0 %v1221_v27  ;;  %v1284_v23 = vpack.c.bf16 %v273_v22, %v272_v21  ;;  %v276_v27 = vld [vmem:[#allocation8 + $0x30] sm:$0xff]  ;;  %v277_v28 = vld [vmem:[#allocation8 + $0x38] sm:$0xff]  ;;  %v1293_v32 = vpack.c.bf16 %v279_v31, %v278_v30  ;;  %v283_v37 = vld [vmem:[#allocation8 + $0x68] sm:$0xff] }
  0xa6   :  { %1223 = vmatprep.subr.bf16.mxu0 %v1614_v0  ;;  %v1290_v29 = vpack.c.bf16 %v277_v28, %v276_v27  ;;  %v281_v34 = vld [vmem:[#allocation8 + $0x58] sm:$0xff]  ;;  %v536_v43 = vld [vmem:[#allocation11 + $0x8] sm:$0xff]  ;;  %v537_v44 = vld [vmem:[#allocation11 + $0x10] sm:$0xff] }
  0xa7   :  { %1246 = vmatpush3.bf16.msra.mxu1 %v1245_v36  ;;  %v282_v36 = vld [vmem:[#allocation8 + $0x60] sm:$0xff]  ;;  %v285_v40 = vld [vmem:[#allocation8 + $0x78] sm:$0xff]  ;;  %v541_v51 = vld [vmem:[#allocation11 + $0x30] sm:$0xff] }
  0xa8   :  { %1247 = vmatprep.subr.bf16.mxu1 %v1614_v0  ;;  %v1299_v38 = vpack.c.bf16 %v283_v37, %v282_v36  ;;  %v538_v46 = vld [vmem:[#allocation11 + $0x18] sm:$0xff]  ;;  %v543_v54 = vld [vmem:[#allocation11 + $0x40] sm:$0xff]  ;;  %v544_v55 = vld [vmem:[#allocation11 + $0x48] sm:$0xff] }
  0xa9   :  { %1225 = vmatpush3.bf16.msra.mxu0 %v1224_v33  ;;  %v280_v33 = vld [vmem:[#allocation8 + $0x50] sm:$0xff]  ;;  %v1308_v47 = vpack.c.bf16 %v538_v46, %v537_v44  ;;  %v542_v52 = vld [vmem:[#allocation11 + $0x38] sm:$0xff]  ;;  %v547_v60 = vld [vmem:[#allocation11 + $0x60] sm:$0xff] }
  0xaa   :  { %1226 = vmatprep.subr.bf16.mxu0 %v1614_v0  ;;  %v1296_v35 = vpack.c.bf16 %v281_v34, %v280_v33  ;;  %v545_v57 = vld [vmem:[#allocation11 + $0x50] sm:$0xff]  ;;  %v546_v58 = vld [vmem:[#allocation11 + $0x58] sm:$0xff]  ;;  %v548_v61 = vld [vmem:[#allocation11 + $0x68] sm:$0xff] }
  0xab   :  { %1249 = vmatpush3.bf16.msra.mxu1 %v1248_v42  ;;  %v535_v42 = vld [vmem:[#allocation11] sm:$0xff]  ;;  %v839_v63 = vld [vmem:[%s1922_s4] ss:$0 sm:$0xff]  ;;  %v554_v11 = vld [vmem:[#allocation13 + $0x10] sm:$0xff] }
  0xac   :  { %1250 = vmatprep.subr.bf16.mxu1 %v1614_v0  ;;  %v550_v7 = vld [vmem:[#allocation11 + $0x78] sm:$0xff]  ;;  %v552_v9 = vld [vmem:[#allocation13] sm:$0xff]  ;;  %v561_v22 = vld [vmem:[#allocation13 + $0x48] sm:$0xff] }
  0xad   :  { %1228 = vmatpush3.bf16.msra.mxu0 %v1227_v39  ;;  %v284_v39 = vld [vmem:[#allocation8 + $0x70] sm:$0xff]  ;;  %v556_v15 = vld [vmem:[#allocation13 + $0x20] sm:$0xff]  ;;  %v563_v25 = vld [vmem:[#allocation13 + $0x58] sm:$0xff] }
  0xae   :  { %1229 = vmatprep.subr.bf16.mxu0 %v1614_v0  ;;  %v1302_v41 = vpack.c.bf16 %v285_v40, %v284_v39  ;;  %v560_v21 = vld [vmem:[#allocation13 + $0x40] sm:$0xff]  ;;  %v562_v24 = vld [vmem:[#allocation13 + $0x50] sm:$0xff]  ;;  %v565_v28 = vld [vmem:[#allocation13 + $0x68] sm:$0xff] }
  0xaf   :  { %1252 = vmatpush3.bf16.msra.mxu1 %v1251_v48  ;;  %v539_v48 = vld [vmem:[#allocation11 + $0x20] sm:$0xff]  ;;  %v840_v30 = vld [vmem:[%s1924_s6] ss:$0 sm:$0xff]  ;;  %v566_v37 = vld [vmem:[#allocation13 + $0x70] sm:$0xff] }
  0xb0   :  { %1253 = vmatprep.subr.bf16.mxu1 %v1614_v0  ;;  %v564_v27 = vld [vmem:[#allocation13 + $0x60] sm:$0xff]  ;;  %v838_v31 = vld [vmem:[%s1926_s8] ss:$0 sm:$0xff] }
  0xb1   :  { %1231 = vmatpush3.bf16.msra.mxu0 %v1230_v45  ;;  %v1305_v45 = vpack.c.bf16 %v536_v43, %v535_v42  ;;  %v724_v40 = vld [vmem:[#allocation14] sm:$0xff]  ;;  %v726_v42 = vld [vmem:[#allocation14 + $0x10] sm:$0xff]  ;;  %v727_v44 = vld [vmem:[#allocation14 + $0x18] sm:$0xff] }
  0xb2   :  { %1256 = vmatprep.subr.bf16.mxu0 %v1614_v0  ;;  %v728_v46 = vld [vmem:[#allocation14 + $0x20] sm:$0xff] }
  0xb3   :  { %1255 = vmatpush3.bf16.msra.mxu1 %v1254_v10  ;;  %v553_v10 = vld [vmem:[#allocation13 + $0x8] sm:$0xff] }
  0xb4   :  { %996 = vmatmul.mubr.f32.vlgmr.msra.gmra.mrb[0].mxu0 %v158_v49  ;;  %1280 = vmatprep.subr.bf16.mxu1 %v1614_v0  ;;  %v540_v49 = vld [vmem:[#allocation11 + $0x28] sm:$0xff] }
  0xb5   :  { %1258 = vmatpush3.bf16.msra.mxu0 %v1257_v50  ;;  %1065 = vmatprep.mubr.msk.f32.mxu0 %vm1615_vm0, %v1616_v1  ;;  %v1311_v50 = vpack.c.bf16 %v540_v49, %v539_v48  ;;  %v731_v49 = vld [vmem:[#allocation14 + $0x38] sm:$0xff] }
  0xb6   :  { %1259 = vmatprep.subr.bf16.mxu0 %v1614_v0 }
  0xb9   :  { %1261 = vmatpush3.bf16.msra.mxu0 %v1260_v53  ;;  %v1314_v53 = vpack.c.bf16 %v542_v52, %v541_v51  ;;  %v732_v51 = vld [vmem:[#allocation14 + $0x40] sm:$0xff]  ;;  %v733_v52 = vld [vmem:[#allocation14 + $0x48] sm:$0xff] }
  0xba   :  { %1262 = vmatprep.subr.bf16.mxu0 %v1614_v0 }
  0xbd   :  { %1264 = vmatpush3.bf16.msra.mxu0 %v1263_v56  ;;  %v1317_v56 = vpack.c.bf16 %v544_v55, %v543_v54  ;;  %v734_v54 = vld [vmem:[#allocation14 + $0x50] sm:$0xff]  ;;  %v735_v55 = vld [vmem:[#allocation14 + $0x58] sm:$0xff] }
  0xbe   :  { %1265 = vmatprep.subr.bf16.mxu0 %v1614_v0 }
  0xc1   :  { %1267 = vmatpush3.bf16.msra.mxu0 %v1266_v59  ;;  %v1320_v59 = vpack.c.bf16 %v546_v58, %v545_v57  ;;  %v841_v57 = vld [vmem:[%s1928_s10] ss:$0 sm:$0xff] }
  0xc2   :  { %1268 = vmatprep.subr.bf16.mxu0 %v1614_v0 }
  0xc5   :  { %1270 = vmatpush3.bf16.msra.mxu0 %v1269_v62  ;;  %v1323_v62 = vpack.c.bf16 %v548_v61, %v547_v60 }
  0xc6   :  { %1271 = vmatprep.subr.bf16.mxu0 %v1614_v0 }
  0xc9   :  { %1273 = vmatpush3.bf16.msra.mxu0 %v1272_v3 }
  0xca   :  { %1274 = vmatprep.subr.bf16.mxu0 %v1614_v0 }
  0xcd   :  { %1276 = vmatpush3.bf16.msra.mxu0 %v1275_v6  ;;  %v549_v6 = vld [vmem:[#allocation11 + $0x70] sm:$0xff] }
  0xce   :  { %1277 = vmatprep.subr.bf16.mxu0 %v1614_v0  ;;  %v1326_v8 = vpack.c.bf16 %v550_v7, %v549_v6  ;;  %v842_v6 = vld [vmem:[%s1930_s12] ss:$0 sm:$0xff] }
  0xd1   :  { %1279 = vmatpush3.bf16.msra.mxu0 %v1278_v12  ;;  %v1329_v12 = vpack.c.bf16 %v553_v10, %v552_v9 }
  0xd2   :  { %1304 = vmatprep.subr.bf16.mxu0 %v1614_v0 }
 0x187   :  { %v248_v16 = vpop.f32.mrb[0].mxu0 }
 0x188   :  { %v249_v17 = vadd.f32 %v837_v13, %v248_v16  ;;  %v997_v18 = vpop.f32.mrb[1].mxu0  ;;  %v555_v13 = vld [vmem:[#allocation13 + $0x18] sm:$0xff]  ;;  %v557_v16 = vld [vmem:[#allocation13 + $0x28] sm:$0xff] }
 0x189   :  { %v1332_v14 = vpack.c.bf16 %v555_v13, %v554_v11  ;;  %v558_v18 = vld [vmem:[#allocation13 + $0x30] sm:$0xff] }
 0x18a   :  { %v252_v20 = vmax.f32 %v249_v17, 0.0  ;;  %v1335_v17 = vpack.c.bf16 %v557_v16, %v556_v15 }
 0x18c   :  { %1031 = vmatmul.mubr.f32.vlgmr.msra.gmra.mrb[0].mxu1 %v252_v20  ;;  %1066 = vmatmul.mubr.f32.vlgmr.msra.gmra.mrb[2].mxu0 %v252_v20 }
 0x18d   :  { %1282 = vmatpush3.bf16.msra.mxu1 %v1281_v19  ;;  %1100 = vmatprep.mubr.msk.f32.mxu1 %vm1615_vm0, %v1616_v1  ;;  %v559_v19 = vld [vmem:[#allocation13 + $0x38] sm:$0xff] }
 0x18e   :  { %1283 = vmatprep.subr.bf16.mxu1 %v1614_v0  ;;  %1135 = vmatprep.mubr.msk.f32.mxu0 %vm1615_vm0, %v1616_v1  ;;  %v1338_v20 = vpack.c.bf16 %v559_v19, %v558_v18 }
 0x18f   :  { %1306 = vmatpush3.bf16.msra.mxu0 %v1305_v45  ;;  %v1356_v45 = vpack.c.bf16 %v727_v44, %v726_v42 }
 0x190   :  { %1307 = vmatprep.subr.bf16.mxu0 %v1614_v0 }
 0x191   :  { %1285 = vmatpush3.bf16.msra.mxu1 %v1284_v23  ;;  %v1341_v23 = vpack.c.bf16 %v561_v22, %v560_v21 }
 0x192   :  { %1286 = vmatprep.subr.bf16.mxu1 %v1614_v0 }
 0x193   :  { %1309 = vmatpush3.bf16.msra.mxu0 %v1308_v47  ;;  %v729_v47 = vld [vmem:[#allocation14 + $0x28] sm:$0xff] }
 0x194   :  { %1310 = vmatprep.subr.bf16.mxu0 %v1614_v0  ;;  %v1359_v48 = vpack.c.bf16 %v729_v47, %v728_v46 }
 0x195   :  { %1288 = vmatpush3.bf16.msra.mxu1 %v1287_v26  ;;  %v1344_v26 = vpack.c.bf16 %v563_v25, %v562_v24 }
 0x196   :  { %1289 = vmatprep.subr.bf16.mxu1 %v1614_v0 }
 0x197   :  { %1312 = vmatpush3.bf16.msra.mxu0 %v1311_v50 }
 0x198   :  { %1313 = vmatprep.subr.bf16.mxu0 %v1614_v0 }
 0x199   :  { %1291 = vmatpush3.bf16.msra.mxu1 %v1290_v29  ;;  %v1347_v29 = vpack.c.bf16 %v565_v28, %v564_v27 }
 0x19a   :  { %1292 = vmatprep.subr.bf16.mxu1 %v1614_v0 }
 0x19b   :  { %1315 = vmatpush3.bf16.msra.mxu0 %v1314_v53  ;;  %v1365_v53 = vpack.c.bf16 %v733_v52, %v732_v51 }
 0x19c   :  { %1316 = vmatprep.subr.bf16.mxu0 %v1614_v0 }
 0x19d   :  { %1294 = vmatpush3.bf16.msra.mxu1 %v1293_v32  ;;  %v1376_v32 = vadd.f32 %v840_v30, %v838_v31 }
 0x19e   :  { %1295 = vmatprep.subr.bf16.mxu1 %v1614_v0 }
 0x19f   :  { %1318 = vmatpush3.bf16.msra.mxu0 %v1317_v56  ;;  %v1368_v56 = vpack.c.bf16 %v735_v55, %v734_v54 }
 0x1a0   :  { %1319 = vmatprep.subr.bf16.mxu0 %v1614_v0 }
 0x1a1   :  { %1297 = vmatpush3.bf16.msra.mxu1 %v1296_v35 }
 0x1a2   :  { %1298 = vmatprep.subr.bf16.mxu1 %v1614_v0 }
 0x1a3   :  { %1321 = vmatpush3.bf16.msra.mxu0 %v1320_v59 }
 0x1a4   :  { %1322 = vmatprep.subr.bf16.mxu0 %v1614_v0 }
 0x1a5   :  { %1300 = vmatpush3.bf16.msra.mxu1 %v1299_v38  ;;  %v567_v38 = vld [vmem:[#allocation13 + $0x78] sm:$0xff] }
 0x1a6   :  { %1301 = vmatprep.subr.bf16.mxu1 %v1614_v0  ;;  %v1350_v39 = vpack.c.bf16 %v567_v38, %v566_v37 }
 0x1a7   :  { %1324 = vmatpush3.bf16.msra.mxu0 %v1323_v62  ;;  %v736_v62 = vld [vmem:[#allocation14 + $0x60] sm:$0xff] }
 0x1a8   :  { %1325 = vmatprep.subr.bf16.mxu0 %v1614_v0 }
 0x1a9   :  { %1303 = vmatpush3.bf16.msra.mxu1 %v1302_v41  ;;  %v725_v41 = vld [vmem:[#allocation14 + $0x8] sm:$0xff] }
 0x1aa   :  { %1328 = vmatprep.subr.bf16.mxu1 %v1614_v0  ;;  %v1353_v43 = vpack.c.bf16 %v725_v41, %v724_v40 }
 0x1ab   :  { %1327 = vmatpush3.bf16.msra.mxu0 %v1326_v8 }
 0x1ac   :  { %1352 = vmatprep.subr.bf16.mxu0 %v1614_v0 }
 0x25f   :  { %v452_v2 = vpop.f32.mrb[2].mxu0 }
 0x260   :  { %v453_v3 = vadd.f32 %v839_v63, %v452_v2  ;;  %v1067_v4 = vpop.f32.mrb[3].mxu0  ;;  %v737_v63 = vld [vmem:[#allocation14 + $0x68] sm:$0xff] }
 0x261   :  { %v1371_v2 = vpack.c.bf16 %v737_v63, %v736_v62  ;;  %v739_v4 = vld [vmem:[#allocation14 + $0x78] sm:$0xff] }
 0x262   :  { %v456_v5 = vmax.f32 %v453_v3, 0.0  ;;  %v738_v3 = vld [vmem:[#allocation14 + $0x70] sm:$0xff] }
 0x264   :  { %1101 = vmatmul.mubr.f32.vlgmr.msra.gmra.mrb[0].mxu1 %v456_v5  ;;  %v1374_v5 = vpack.c.bf16 %v739_v4, %v738_v3 }
 0x265   :  { %1170 = vmatprep.mubr.msk.f32.mxu1 %vm1615_vm0, %v1616_v1  ;;  %1330 = vmatpush3.bf16.msra.mxu1 %v1329_v12  ;;  %v843_v12 = vld [vmem:[%s1932_s14] ss:$0 sm:$0xff] }
 0x266   :  { %1331 = vmatprep.subr.bf16.mxu1 %v1614_v0 }
 0x269   :  { %1333 = vmatpush3.bf16.msra.mxu1 %v1332_v14 }
 0x26a   :  { %1334 = vmatprep.subr.bf16.mxu1 %v1614_v0 }
 0x26d   :  { %1336 = vmatpush3.bf16.msra.mxu1 %v1335_v17 }
 0x26e   :  { %1337 = vmatprep.subr.bf16.mxu1 %v1614_v0 }
 0x271   :  { %1339 = vmatpush3.bf16.msra.mxu1 %v1338_v20 }
 0x272   :  { %1340 = vmatprep.subr.bf16.mxu1 %v1614_v0 }
 0x275   :  { %1342 = vmatpush3.bf16.msra.mxu1 %v1341_v23 }
 0x276   :  { %1343 = vmatprep.subr.bf16.mxu1 %v1614_v0 }
 0x279   :  { %1345 = vmatpush3.bf16.msra.mxu1 %v1344_v26 }
 0x27a   :  { %1346 = vmatprep.subr.bf16.mxu1 %v1614_v0 }
 0x27d   :  { %1348 = vmatpush3.bf16.msra.mxu1 %v1347_v29 }
 0x27e   :  { %1349 = vmatprep.subr.bf16.mxu1 %v1614_v0 }
 0x281   :  { %1351 = vmatpush3.bf16.msra.mxu1 %v1350_v39 }
 0x337   :  { %v529_v33 = vpop.f32.mrb[0].mxu1 }
 0x338   :  { %v1377_v34 = vadd.f32 %v1376_v32, %v529_v33  ;;  %v1102_v35 = vpop.f32.mrb[1].mxu1 }
 0x33a   :  { %v534_v36 = vmax.f32 %v1377_v34, 0.0 }
 0x33c   :  { %1136 = vmatmul.mubr.f32.vlgmr.msra.gmra.mrb[4].mxu0 %v534_v36 }
 0x33d   :  { %1205 = vmatprep.mubr.msk.f32.mxu0 %vm1615_vm0, %v1616_v1  ;;  %1354 = vmatpush3.bf16.msra.mxu0 %v1353_v43  ;;  %v730_v1 = vld [vmem:[#allocation14 + $0x30] sm:$0xff] }
 0x33e   :  { %1355 = vmatprep.subr.bf16.mxu0 %v1614_v0  ;;  %v1362_v50 = vpack.c.bf16 %v731_v49, %v730_v1 }
 0x341   :  { %1357 = vmatpush3.bf16.msra.mxu0 %v1356_v45 }
 0x342   :  { %1358 = vmatprep.subr.bf16.mxu0 %v1614_v0 }
 0x345   :  { %1360 = vmatpush3.bf16.msra.mxu0 %v1359_v48 }
 0x346   :  { %1361 = vmatprep.subr.bf16.mxu0 %v1614_v0 }
 0x349   :  { %1363 = vmatpush3.bf16.msra.mxu0 %v1362_v50 }
 0x34a   :  { %1364 = vmatprep.subr.bf16.mxu0 %v1614_v0 }
 0x34d   :  { %1366 = vmatpush3.bf16.msra.mxu0 %v1365_v53 }
 0x34e   :  { %1367 = vmatprep.subr.bf16.mxu0 %v1614_v0 }
 0x351   :  { %1369 = vmatpush3.bf16.msra.mxu0 %v1368_v56 }
 0x352   :  { %1370 = vmatprep.subr.bf16.mxu0 %v1614_v0 }
 0x355   :  { %1372 = vmatpush3.bf16.msra.mxu0 %v1371_v2 }
 0x356   :  { %1373 = vmatprep.subr.bf16.mxu0 %v1614_v0 }
 0x359   :  { %1375 = vmatpush3.bf16.msra.mxu0 %v1374_v5 }
 0x40f   :  { %v641_v58 = vpop.f32.mrb[4].mxu0 }
 0x410   :  { %v642_v59 = vadd.f32 %v841_v57, %v641_v58  ;;  %v1137_v60 = vpop.f32.mrb[5].mxu0 }
 0x412   :  { %v645_v61 = vmax.f32 %v642_v59, 0.0 }
 0x414   :  { %1171 = vmatmul.mubr.f32.vlgmr.msra.gmra.mrb[2].mxu1 %v645_v61 }
 0x4e7   :  { %v718_v7 = vpop.f32.mrb[2].mxu1 }
 0x4e8   :  { %v719_v8 = vadd.f32 %v842_v6, %v718_v7  ;;  %v1172_v9 = vpop.f32.mrb[3].mxu1 }
 0x4ea   :  { %v722_v10 = vadd.f32 %v719_v8, %v534_v36 }
 0x4ec   :  { %v723_v11 = vmax.f32 %v722_v10, 0.0 }
 0x4ee   :  { %1206 = vmatmul.mubr.f32.vlgmr.msra.gmra.mrb[6].mxu0 %v723_v11 }
 0x5c1   :  { %v813_v0 = vpop.f32.mrb[6].mxu0 }
 0x5c2   :  { %v814_v13 = vadd.f32 %v843_v12, %v813_v0  ;;  %v1207_v14 = vpop.f32.mrb[7].mxu0 }
 0x5c4   :  { %817 = vst [vmem:[#allocation16] sm:$0xff] %v814_v13 }
 0x5c5   :  { %1581 = shalt.err (!%p1578_p12)
}
 0x5c6   :  { %s1936_s24 = sld [smem:[#allocation23_spill]] }
 0x5cc   :  { %s1582_s25 = scalar_lea.hbm %s1936_s24, 128 }
 0x5cd   :  { %p1583_p13 = scmp.ne.s32.totalorder %s1936_s24, %s1582_s25  ;;  %p1586_p0 = scmp.lt.u32.totalorder %s1582_s25, %s1936_s24 }
 0x5cf   :  { %p1588_p1 = pnand %p1586_p0, %p1583_p13 }
 0x5d1   :  { %1591 = shalt.err (!%p1588_p1)
}
 0x5d2   :  { %827 = dma.vmem_to_hbm [thread:$0]  %s825_s7, 128, %s1936_s24, [#allocation4]  }
 0x5d3   :  { %1602 = dma.done.wait [#allocation4], 128  }
 0x5d4   :  { %1603 = vsyncadd [#allocation4], 4294967168 }
 0x5d5   :  { %831 = vsyncpa [#allocation3], 1 }
 0x5d6   :  { %832 = vsyncpa [#allocation6], 1 }
 0x5d7   :  { %833 = vsyncpa [#allocation9], 1 }
 0x5d8   :  { %834 = vsyncpa [#allocation12], 1 }
 0x5d9   :  { %835 = vsyncpa [#allocation15], 1 }
 0x5da   :  { %836 = vsyncpa [#allocation4], 1 }

</bundles_post_ra>
